<compile_context>
chip_gen: v7x
topology: tpu7x:2x2x1
jax: 0.10.0
libtpu: 0.0.40
codegen_flags: <defaults>
</compile_context>

<pallas_src>
import jax
import jax.numpy as jnp
from jax.experimental import pallas as pl
from jax.experimental.pallas import tpu as pltpu

LANE = 1024                          # lane-dense last dim (multiple of 128)
_TARGET_TILE_BYTES = 4 * 1024 * 1024  # ~4 MiB per tile -> ~16 MiB resident (2x in + 2x out)
_SMALL_INPUT_BYTES = 1 << 20         # below this, let XLA fuse x * 2.0 instead


def _lambda_kernel(x_ref, o_ref):
    # The lambda body: lambda x: x * 2.0   (elementwise, runs on the VPU)
    o_ref[...] = x_ref[...] * 2.0


def _pallas_lambda_2d(x2d):
    """Run the elementwise lambda on a lane-dense (rows, LANE) view."""
    rows, lane = x2d.shape
    itemsize = jnp.dtype(x2d.dtype).itemsize

    # Rows per tile: target ~4 MiB tiles, keep a multiple of 32 sublanes so the
    # block shape is valid for f32/bf16/int8 packing alike.  If the whole array
    # is smaller than one tile, use the full row extent (full-dim exception to
    # the (8,128) rule).
    rows_per_tile = max(32, (_TARGET_TILE_BYTES // (lane * itemsize)) // 32 * 32)
    block_rows = rows if rows <= rows_per_tile else rows_per_tile

    grid = (pl.cdiv(rows, block_rows),)
    nbytes = rows * lane * itemsize

    return pl.pallas_call(
        _lambda_kernel,
        out_shape=jax.ShapeDtypeStruct((rows, lane), x2d.dtype),
        grid=grid,
        in_specs=[pl.BlockSpec((block_rows, lane), lambda i: (i, 0))],
        out_specs=pl.BlockSpec((block_rows, lane), lambda i: (i, 0)),
        compiler_params=pltpu.CompilerParams(
            # Elementwise, embarrassingly parallel -> let v7x's 2 TCs split it.
            dimension_semantics=("parallel",),
            # Safe on every generation (v7x physical VMEM is 64 MiB; v5e scoped
            # default is only 16 MiB, which 2x(in)+2x(out) 4 MiB tiles exceed).
            vmem_limit_bytes=32 * 1024 * 1024,
        ),
        cost_estimate=pl.CostEstimate(
            flops=rows * lane,
            transcendentals=0,
            bytes_accessed=2 * nbytes,
        ),
    )(x2d)


def lambda_module_forward(x, *, force_pallas=False):
    """Pallas implementation of LambdaModule(lambda x: x * 2.0).forward(x)."""
    orig_shape = x.shape
    n = x.size
    itemsize = jnp.dtype(x.dtype).itemsize

    # For tiny tensors a standalone pallas_call's launch/DMA overhead dominates;
    # let XLA fuse the elementwise lambda into neighboring ops instead.
    if not force_pallas and n * itemsize < _SMALL_INPUT_BYTES:
        return x * 2.0

    # Glue (no data movement beyond an optional flat pad): present a lane-dense
    # 2D view (rows, LANE) to the kernel, then strip padding and reshape back.
    xflat = x.reshape(-1)
    pad = (-n) % LANE
    if pad:
        xflat = jnp.pad(xflat, (0, pad))
    rows = xflat.size // LANE

    out2d = _pallas_lambda_2d(xflat.reshape(rows, LANE))

    out_flat = out2d.reshape(-1)
    if pad:
        out_flat = out_flat[:n]
    return out_flat.reshape(orig_shape)


if __name__ == "__main__":
    key = jax.random.PRNGKey(0)
    # Input consistent with an NCHW tensor: batch=2, channels=4, spatial=16x16.
    x = jax.random.normal(key, (2, 4, 16, 16), dtype=jnp.float32)

    # force_pallas=True so the Pallas path is exercised even at this small size
    # (production callers would rely on the small-input XLA-fusion fast path).
    out = lambda_module_forward(x, force_pallas=True)
    out = jax.block_until_ready(out)

    # Reference check against the plain-JAX lambda.
    ref = x * 2.0
    assert out.shape == ref.shape and out.dtype == ref.dtype
    assert jnp.allclose(out, ref, atol=1e-6, rtol=1e-6)

    print("KERNEL_OK")
</pallas_src>

<mosaic_0001>
module attributes {stable_mosaic.version = 11 : i64} {
  func.func @_lambda_kernel(%arg0: i32, %arg1: memref<2x1024xf32, #tpu.memory_space<vmem>>, %arg2: memref<2x1024xf32, #tpu.memory_space<vmem>>) attributes {dimension_semantics = [#tpu.dimension_semantics<parallel>], iteration_bounds = array<i64: 1>, scalar_prefetch = 0 : i64, scratch_operands = 0 : i64, tpu.core_type = #tpu.core_type<tc>, window_params = [{transform_indices = @transform_0, window_bounds = array<i64: 2, 1024>}, {transform_indices = @transform_1, window_bounds = array<i64: 2, 1024>}]} {
    %c0 = arith.constant 0 : index
    %c0_0 = arith.constant 0 : index
    %0 = vector.load %arg1[%c0, %c0_0] : memref<2x1024xf32, #tpu.memory_space<vmem>>, vector<2x1024xf32>
    %cst = arith.constant 2.000000e+00 : f32
    %1 = vector.broadcast %cst : f32 to vector<2x1024xf32>
    %2 = arith.mulf %0, %1 : vector<2x1024xf32>
    %c0_1 = arith.constant 0 : index
    %c0_2 = arith.constant 0 : index
    %3 = vector.load %arg2[%c0_1, %c0_2] : memref<2x1024xf32, #tpu.memory_space<vmem>>, vector<2x1024xf32>
    tpu.vector_store %arg2[%c0_1, %c0_2], %2 {strides = array<i32>} : memref<2x1024xf32, #tpu.memory_space<vmem>>, vector<2x1024xf32>,
    return
  }
  func.func @transform_0(%arg0: i32) -> (i32, i32) {
    %c0_i32 = arith.constant 0 : i32
    %c0_i32_0 = arith.constant 0 : i32
    return %arg0, %c0_i32 : i32, i32
  }
  func.func @transform_1(%arg0: i32) -> (i32, i32) {
    %c0_i32 = arith.constant 0 : i32
    %c0_i32_0 = arith.constant 0 : i32
    return %arg0, %c0_i32 : i32, i32
  }
}

</mosaic_0001>

<bundles_post_ra>
// kernel: tpu_custom_call.1
= control target key start
LH: loop header
LB: loop body
LE: loop exit
PB: predicated region body
PF: predicated region fallthrough
CT: control target
= control target key end

     0   :  { %6 = vsyncpa [#allocation3], 0  ;;  %s128_s0 = inlined_call_operand.hbm [shape: f32[2,1024], index: 0, kind: input, shape index: {}]   ;;  %s129_s1 = inlined_call_operand.hbm [shape: f32[2,1024], index: 1, kind: output, shape index: {}]  }
   0x1   :  { %7 = vsyncpa [#allocation4], 0  ;;  %s92_s6 = smov [#allocation2]   ;;  %s44_s10 = scalar_lea.hbm %s128_s0, 256 }
   0x2   :  { %s14_s7 = sshll.u32 %s92_s6, 4  ;;  %p45_p0 = scmp.ne.s32.totalorder %s128_s0, %s44_s10  ;;  %s15_s7 = int_to_ptr.vmem [resolvable:$true] %s14_s7 }
   0x3   :  { %p48_p1 = scmp.lt.u32.totalorder %s44_s10, %s128_s0 }
   0x5   :  { %p50_p2 = pnand %p48_p1, %p45_p0 }
   0x7   :  { %53 = shalt.err (!%p50_p2)
}
   0x8   :  { %s54_s15 = scalar_lea.vmem %s15_s7, 256  ;;  %p59_p4 = scmp.lt.s32.totalorder %s15_s7, %s15_s7 }
   0x9   :  { %p55_p3 = scmp.ne.s32.totalorder %s15_s7, %s54_s15  ;;  %p60_p5 = scmp.lt.s32.totalorder %s54_s15, %s54_s15 }
   0xb   :  { %p61_p6 = por %p60_p5, %p59_p4 }
   0xd   :  { %p62_p7 = pnand %p61_p6, %p55_p3 }
   0xf   :  { %65 = shalt.err (!%p62_p7)
}
  0x10   :  { %17 = dma.hbm_to_vmem [thread:$0]  %s128_s0, 256, %s15_s7, [#allocation3]  }
  0x11   :  { %88 = dma.done.wait [#allocation3], 256  }
  0x12   :  { %89 = vsyncadd [#allocation3], 4294967040  ;;  %s93_s18 = smov [#allocation5]   ;;  %v21_v0 = vld [vmem:[#allocation2] sm:$0xff]  ;;  %v22_v1 = vld [vmem:[#allocation2 + $0x8] sm:$0xff] }
  0x13   :  { %s33_s19 = sshll.u32 %s93_s18, 4  ;;  %v23_v2 = vmul.f32 2.0, %v21_v0  ;;  %v24_v3 = vmul.f32 2.0, %v22_v1  ;;  %s34_s19 = int_to_ptr.vmem [resolvable:$true] %s33_s19 }
  0x14   :  { %s66_s20 = scalar_lea.vmem %s34_s19, 256  ;;  %p71_p9 = scmp.lt.s32.totalorder %s34_s19, %s34_s19 }
  0x15   :  { %25 = vst [vmem:[#allocation5] sm:$0xff] %v23_v2  ;;  %26 = vst [vmem:[#allocation5 + $0x8] sm:$0xff] %v24_v3  ;;  %p67_p8 = scmp.ne.s32.totalorder %s34_s19, %s66_s20  ;;  %p72_p10 = scmp.lt.s32.totalorder %s66_s20, %s66_s20 }
  0x17   :  { %p73_p11 = por %p72_p10, %p71_p9 }
  0x19   :  { %p74_p12 = pnand %p73_p11, %p67_p8 }
  0x1b   :  { %77 = shalt.err (!%p74_p12)
}
  0x1c   :  { %s78_s22 = scalar_lea.hbm %s129_s1, 256 }
  0x1d   :  { %p79_p13 = scmp.ne.s32.totalorder %s129_s1, %s78_s22  ;;  %p82_p0 = scmp.lt.u32.totalorder %s78_s22, %s129_s1 }
  0x1f   :  { %p84_p1 = pnand %p82_p0, %p79_p13 }
  0x21   :  { %87 = shalt.err (!%p84_p1)
}
  0x22   :  { %36 = dma.vmem_to_hbm [thread:$0]  %s34_s19, 256, %s129_s1, [#allocation4]  }
  0x23   :  { %90 = dma.done.wait [#allocation4], 256  }
  0x24   :  { %91 = vsyncadd [#allocation4], 4294967040 }
  0x25   :  { %40 = vsyncpa [#allocation3], 1 }
  0x26   :  { %41 = vsyncpa [#allocation4], 1 }

</bundles_post_ra>
